<compile_context>
chip_gen: v6e
topology: v6e:2x2x1
jax: 0.10.0
libtpu: 0.0.40
codegen_flags: <defaults>
</compile_context>

<pallas_src>
import functools
import inspect

import jax
import jax.numpy as jnp
from jax.experimental import pallas as pl
from jax.experimental.pallas import tpu as pltpu


def _supports_multi_buffer():
    if not hasattr(pl, "Buffered"):
        return False
    try:
        return "pipeline_mode" in inspect.signature(pl.BlockSpec).parameters
    except (TypeError, ValueError):
        return False


_SUPPORTS_MULTI_BUFFER = _supports_multi_buffer()


def _chip_params():
    """Generation-aware VMEM / tiling budgets."""
    kind = ""
    try:
        kind = jax.devices()[0].device_kind.lower()
    except Exception:
        pass
    if ("v7" in kind) or ("7x" in kind):
        # v7x: 64 MiB physical VMEM per TC, 2 TCs/chip -> smaller blocks,
        # modest scoped limit, and keep >= 2 tiles so both cores get work.
        return dict(vmem_limit_bytes=40 * 1024 * 1024,
                    block_budget_bytes=2 * 1024 * 1024,
                    min_tiles=2)
    # v5e / v6e: 128 MiB physical VMEM, single TensorCore. Purely HBM-bound
    # kernel -> bigger resident tiles are the main lever.
    return dict(vmem_limit_bytes=64 * 1024 * 1024,
                block_budget_bytes=4 * 1024 * 1024,
                min_tiles=1)


def _pick_tile_rows(n, c, itemsize, *, block_budget_bytes, vmem_limit_bytes,
                    min_tiles):
    """Largest batch tile that fits the *real* VMEM footprint.

    Live VMEM ~= 2 buffers x 2 inputs x (tn*C*itemsize)   (pipelined blocks)
               + ~6 x tn*C*4                               (f32 temporaries)
    plus a tiny (8,128) partial-sum output block.
    """
    budget = int(0.70 * vmem_limit_bytes)          # leave headroom for Mosaic
    per_row = 2 * 2 * c * itemsize + 6 * c * 4     # bytes of live VMEM per row
    tn_foot = budget // max(1, per_row)
    tn_blk = block_budget_bytes // max(1, c * itemsize)
    tn = max(8, min(tn_foot, tn_blk))
    tn -= tn % 8

    if min_tiles > 1 and n >= 16:
        # v7x: force >= 2 tiles so the "parallel" grid axis spans both TCs.
        half = (((n + 1) // 2) + 7) // 8 * 8
        tn = min(tn, half)

    tn = max(8, tn)
    if tn >= n:
        return n  # full batch in one block (block dim == array dim is allowed)
    return tn


def _distill_kl_kernel(y_s_ref, y_t_ref, out_ref, *, inv_t, n_rows, tile_rows):
    i = pl.program_id(0)

    # Compute in f32 regardless of input dtype; scale by 1/T with a multiply.
    y_s = y_s_ref[...].astype(jnp.float32) * inv_t
    y_t = y_t_ref[...].astype(jnp.float32) * inv_t

    # Student log-softmax pieces (per row, class axis = lanes).
    s_max = jnp.max(y_s, axis=1, keepdims=True)
    s_shift = y_s - s_max
    s_logz = jnp.log(jnp.sum(jnp.exp(s_shift), axis=1, keepdims=True))

    # Teacher softmax pieces.
    t_max = jnp.max(y_t, axis=1, keepdims=True)
    t_shift = y_t - t_max
    t_exp = jnp.exp(t_shift)
    t_z = jnp.sum(t_exp, axis=1, keepdims=True)
    log_t_z = jnp.log(t_z)

    # KL(p_t || p_s) per row, folded with sum_c p_t == 1:
    #   kl_row = sum_c p_t * (t_shift - s_shift) + (s_logz - log t_z)
    # -> only one divide per row (after the lane reduction), 2 exp/element.
    weighted = jnp.sum(t_exp * (t_shift - s_shift), axis=1, keepdims=True)
    kl_row = weighted / t_z + (s_logz - log_t_z)            # (tile_rows, 1)

    # Mask rows past the true batch size (partial last tile may hold garbage).
    # Max-subtraction above keeps garbage rows finite-or-masked either way.
    row_ids = jax.lax.broadcasted_iota(jnp.int32, kl_row.shape, 0) + i * tile_rows
    kl_row = jnp.where(row_ids < n_rows, kl_row, 0.0)

    tile_sum = jnp.sum(kl_row)
    # Lane-dense (1, 8, 128) partial-sum block -> unmasked stores and a fully
    # "parallel" grid axis; the wrapper reads [:, 0, 0] and does the tiny sum.
    out_ref[...] = jnp.full(out_ref.shape, tile_sum, dtype=jnp.float32)


def distill_kl(y_s, y_t, temperature=1.0, tile_rows=None):
    """Pallas implementation of DistillKL.forward for (N, C) logits."""
    assert y_s.shape == y_t.shape and y_s.ndim == 2
    n, c = y_s.shape
    t = float(temperature)
    itemsize = jnp.dtype(y_s.dtype).itemsize

    params = _chip_params()
    vmem_limit = params["vmem_limit_bytes"]

    if tile_rows is None:
        tn = _pick_tile_rows(n, c, itemsize,
                             block_budget_bytes=params["block_budget_bytes"],
                             vmem_limit_bytes=vmem_limit,
                             min_tiles=params["min_tiles"])
    else:
        tn = min(int(tile_rows), n)
    num_tiles = pl.cdiv(n, tn)

    # TODO(synk): small C (e.g. C=16) wastes 7/8 of the 128 lanes; pack
    #   128//C rows per lane row (reshape (N,C)->(N/k, k*C)) with a segmented
    #   block-diagonal MXU reduction to recover bandwidth/vector utilization.
    # TODO(synk): for vocab-scale C (>~16K) tile the class axis with an online
    #   (running max/sum) softmax instead of keeping a full row in VMEM.
    # TODO(synk): if v7x profiling shows EUP/XLU-bound (not HBM-bound), offload
    #   the three lane sums to the idle MXU via jnp.dot(x, ones((C, 128))).

    kernel = functools.partial(
        _distill_kl_kernel, inv_t=1.0 / t, n_rows=n, tile_rows=tn)

    # Triple-buffer the two input streams when there are enough grid steps and
    # the extra buffer fits comfortably in VMEM (hides DMA issue jitter on the
    # memory-bound path; skipped automatically when VMEM is tight, e.g. v7x).
    buffers = 2
    if _SUPPORTS_MULTI_BUFFER and num_tiles >= 4:
        foot3 = 3 * 2 * tn * c * itemsize + 6 * tn * c * 4
        if foot3 <= int(0.70 * vmem_limit):
            buffers = 3

    def _in_spec():
        if buffers > 2:
            return pl.BlockSpec((tn, c), lambda i: (i, 0),
                                pipeline_mode=pl.Buffered(buffers))
        return pl.BlockSpec((tn, c), lambda i: (i, 0))

    cost = pl.CostEstimate(
        flops=10 * n * c,
        transcendentals=2 * n * c,
        bytes_accessed=2 * n * c * itemsize + num_tiles * 8 * 128 * 4,
    )

    partials = pl.pallas_call(
        kernel,
        out_shape=jax.ShapeDtypeStruct((num_tiles, 8, 128), jnp.float32),
        grid_spec=pltpu.PrefetchScalarGridSpec(
            num_scalar_prefetch=0,
            grid=(num_tiles,),
            in_specs=[_in_spec(), _in_spec()],
            out_specs=pl.BlockSpec((1, 8, 128), lambda i: (i, 0, 0)),
        ),
        compiler_params=pltpu.CompilerParams(
            dimension_semantics=("parallel",),
            vmem_limit_bytes=vmem_limit,
        ),
        cost_estimate=cost,
    )(y_s, y_t)

    total_kl = jnp.sum(partials[:, 0, 0])
    # batchmean (/N), then the module's extra * T**2 / N  -> * T^2 / N^2.
    return total_kl * (t * t) / (float(n) * float(n))


def _reference(y_s, y_t, temperature=1.0):
    """Pure-JAX reference matching the PyTorch module."""
    t = float(temperature)
    log_p_s = jax.nn.log_softmax(y_s.astype(jnp.float32) / t, axis=1)
    p_t = jax.nn.softmax(y_t.astype(jnp.float32) / t, axis=1)
    kl = jnp.sum(p_t * (jnp.log(p_t) - log_p_s))
    n = y_s.shape[0]
    return kl / n * t ** 2 / n


if __name__ == "__main__":
    key = jax.random.PRNGKey(0)
    k1, k2, k3, k4, k5, k6 = jax.random.split(key, 6)

    # Case 1: tiny shapes consistent with the module (batch=2, 16-way logits).
    N1, C1, T1 = 2, 16, 4.0
    y_s1 = jax.random.normal(k1, (N1, C1), dtype=jnp.float32)
    y_t1 = jax.random.normal(k2, (N1, C1), dtype=jnp.float32)
    loss1 = distill_kl(y_s1, y_t1, temperature=T1)
    jax.block_until_ready(loss1)
    ref1 = _reference(y_s1, y_t1, temperature=T1)
    assert jnp.allclose(loss1, ref1, rtol=5e-5, atol=1e-6), (loss1, ref1)

    # Case 2: multi-tile grid with a partial last tile (exercises masking).
    N2, C2, T2 = 20, 128, 2.0
    y_s2 = jax.random.normal(k3, (N2, C2), dtype=jnp.float32)
    y_t2 = jax.random.normal(k4, (N2, C2), dtype=jnp.float32)
    loss2 = distill_kl(y_s2, y_t2, temperature=T2, tile_rows=8)
    jax.block_until_ready(loss2)
    ref2 = _reference(y_s2, y_t2, temperature=T2)
    assert jnp.allclose(loss2, ref2, rtol=5e-5, atol=1e-6), (loss2, ref2)

    # Case 3: enough tiles (8) to trigger the triple-buffered input path.
    N3, C3, T3 = 64, 64, 1.0
    y_s3 = jax.random.normal(k5, (N3, C3), dtype=jnp.float32)
    y_t3 = jax.random.normal(k6, (N3, C3), dtype=jnp.float32)
    loss3 = distill_kl(y_s3, y_t3, temperature=T3, tile_rows=8)
    jax.block_until_ready(loss3)
    ref3 = _reference(y_s3, y_t3, temperature=T3)
    assert jnp.allclose(loss3, ref3, rtol=5e-5, atol=1e-6), (loss3, ref3)

    print("KERNEL_OK")
</pallas_src>

<mosaic_0001>
module attributes {stable_mosaic.version = 11 : i64} {
  func.func @_distill_kl_kernel(%arg0: i32, %arg1: memref<2x16xf32, #tpu.memory_space<vmem>>, %arg2: memref<2x16xf32, #tpu.memory_space<vmem>>, %arg3: memref<1x8x128xf32, #tpu.memory_space<vmem>>) attributes {dimension_semantics = [#tpu.dimension_semantics<parallel>], iteration_bounds = array<i64: 1>, scalar_prefetch = 0 : i64, scratch_operands = 0 : i64, tpu.core_type = #tpu.core_type<tc>, window_params = [{transform_indices = @transform_0, window_bounds = array<i64: 2, 16>}, {transform_indices = @transform_1, window_bounds = array<i64: 2, 16>}, {transform_indices = @transform_2, window_bounds = array<i64: 1, 8, 128>}]} {
    %c0 = arith.constant 0 : index
    %c0_0 = arith.constant 0 : index
    %0 = vector.load %arg1[%c0, %c0_0] : memref<2x16xf32, #tpu.memory_space<vmem>>, vector<2x16xf32>
    %cst = arith.constant 2.500000e-01 : f32
    %1 = vector.broadcast %cst : f32 to vector<2x16xf32>
    %2 = arith.mulf %0, %1 : vector<2x16xf32>
    %c0_1 = arith.constant 0 : index
    %c0_2 = arith.constant 0 : index
    %3 = vector.load %arg2[%c0_1, %c0_2] : memref<2x16xf32, #tpu.memory_space<vmem>>, vector<2x16xf32>
    %cst_3 = arith.constant 2.500000e-01 : f32
    %4 = vector.broadcast %cst_3 : f32 to vector<2x16xf32>
    %5 = arith.mulf %3, %4 : vector<2x16xf32>
    %cst_4 = arith.constant dense<0xFF800000> : vector<2xf32>
    %6 = vector.multi_reduction <maximumf>, %2, %cst_4 [1] : vector<2x16xf32> to vector<2xf32>
    %7 = vector.shape_cast %6 : vector<2xf32> to vector<2x1xf32>
    %8 = vector.broadcast %7 : vector<2x1xf32> to vector<2x16xf32>
    %9 = arith.subf %2, %8 : vector<2x16xf32>
    %10 = math.exp %9 : vector<2x16xf32>
    %cst_5 = arith.constant dense<0.000000e+00> : vector<2xf32>
    %11 = vector.multi_reduction <add>, %10, %cst_5 [1] : vector<2x16xf32> to vector<2xf32>
    %12 = vector.shape_cast %11 : vector<2xf32> to vector<2x1xf32>
    %13 = math.log %12 : vector<2x1xf32>
    %cst_6 = arith.constant dense<0xFF800000> : vector<2xf32>
    %14 = vector.multi_reduction <maximumf>, %5, %cst_6 [1] : vector<2x16xf32> to vector<2xf32>
    %15 = vector.shape_cast %14 : vector<2xf32> to vector<2x1xf32>
    %16 = vector.broadcast %15 : vector<2x1xf32> to vector<2x16xf32>
    %17 = arith.subf %5, %16 : vector<2x16xf32>
    %18 = math.exp %17 : vector<2x16xf32>
    %cst_7 = arith.constant dense<0.000000e+00> : vector<2xf32>
    %19 = vector.multi_reduction <add>, %18, %cst_7 [1] : vector<2x16xf32> to vector<2xf32>
    %20 = vector.shape_cast %19 : vector<2xf32> to vector<2x1xf32>
    %21 = math.log %20 : vector<2x1xf32>
    %22 = arith.subf %17, %9 : vector<2x16xf32>
    %23 = arith.mulf %18, %22 : vector<2x16xf32>
    %cst_8 = arith.constant dense<0.000000e+00> : vector<2xf32>
    %24 = vector.multi_reduction <add>, %23, %cst_8 [1] : vector<2x16xf32> to vector<2xf32>
    %25 = vector.shape_cast %24 : vector<2xf32> to vector<2x1xf32>
    %26 = arith.divf %25, %20 : vector<2x1xf32>
    %27 = arith.subf %13, %21 : vector<2x1xf32>
    %28 = arith.addf %26, %27 : vector<2x1xf32>
    %29 = tpu.iota {dimensions = array<i32: 0>} : vector<2x1xi32>
    %c2_i32 = arith.constant 2 : i32
    %30 = arith.muli %arg0, %c2_i32 : i32
    %31 = vector.broadcast %30 : i32 to vector<2x1xi32>
    %32 = arith.addi %29, %31 : vector<2x1xi32>
    %c2_i32_9 = arith.constant 2 : i32
    %33 = vector.broadcast %c2_i32_9 : i32 to vector<2x1xi32>
    %34 = arith.cmpi slt, %32, %33 : vector<2x1xi32>
    %cst_10 = arith.constant 0.000000e+00 : f32
    %35 = vector.broadcast %cst_10 : f32 to vector<2x1xf32>
    %36 = arith.select %34, %28, %35 : vector<2x1xi1>, vector<2x1xf32>
    %37 = vector.shape_cast %36 : vector<2x1xf32> to vector<1x2x1xf32>
    %cst_11 = arith.constant dense<0.000000e+00> : vector<1xf32>
    %38 = vector.multi_reduction <add>, %37, %cst_11 [1, 2] : vector<1x2x1xf32> to vector<1xf32>
    %39 = vector.shape_cast %38 : vector<1xf32> to vector<1x1x1xf32>
    %40 = vector.extract %39[0, 0, 0] : f32 from vector<1x1x1xf32>
    %41 = vector.broadcast %40 : f32 to vector<1x8x128xf32>
    %c0_12 = arith.constant 0 : index
    %c0_13 = arith.constant 0 : index
    %c0_14 = arith.constant 0 : index
    %42 = vector.load %arg3[%c0_12, %c0_13, %c0_14] : memref<1x8x128xf32, #tpu.memory_space<vmem>>, vector<1x8x128xf32>
    tpu.vector_store %arg3[%c0_12, %c0_13, %c0_14], %41 {strides = array<i32>} : memref<1x8x128xf32, #tpu.memory_space<vmem>>, vector<1x8x128xf32>,
    return
  }
  func.func @transform_0(%arg0: i32) -> (i32, i32) {
    %c0_i32 = arith.constant 0 : i32
    %c0_i32_0 = arith.constant 0 : i32
    return %arg0, %c0_i32 : i32, i32
  }
  func.func @transform_1(%arg0: i32) -> (i32, i32) {
    %c0_i32 = arith.constant 0 : i32
    %c0_i32_0 = arith.constant 0 : i32
    return %arg0, %c0_i32 : i32, i32
  }
  func.func @transform_2(%arg0: i32) -> (i32, i32, i32) {
    %c0_i32 = arith.constant 0 : i32
    %c0_i32_0 = arith.constant 0 : i32
    %c0_i32_1 = arith.constant 0 : i32
    return %arg0, %c0_i32, %c0_i32_0 : i32, i32, i32
  }
}

</mosaic_0001>

<bundles_post_ra>
// kernel: tpu_custom_call.1
= control target key start
LH: loop header
LB: loop body
LE: loop exit
PB: predicated region body
PF: predicated region fallthrough
CT: control target
= control target key end

     0   :  { %7 = vsyncpa [#allocation3], 0  ;;  %s221_s0 = inlined_call_operand.hbm [shape: f32[2,16], index: 0, kind: input, shape index: {}]   ;;  %s222_s1 = inlined_call_operand.hbm [shape: f32[2,16], index: 1, kind: input, shape index: {}]   ;;  %s223_s2 = inlined_call_operand.hbm [shape: f32[1,8,128], index: 2, kind: output, shape index: {}]  }
   0x1   :  { %8 = vsyncpa [#allocation6], 0 }
   0x2   :  { %9 = vsyncpa [#allocation4], 0  ;;  %s189_s9 = smov [#allocation2]   ;;  %s190_s11 = smov [#allocation5]  }
   0x3   :  { %s16_s10 = sshll.u32 %s189_s9, 4  ;;  %s26_s12 = sshll.u32 %s190_s11, 4  ;;  %s17_s10 = int_to_ptr.vmem [resolvable:$true] %s16_s10  ;;  %s27_s12 = int_to_ptr.vmem [resolvable:$true] %s26_s12 }
   0x4   :  { %s131_s13 = scalar_lea.vmem %s17_s10, 32  ;;  %p136_p1 = scmp.lt.s32.totalorder %s17_s10, %s17_s10 }
   0x5   :  { %p132_p0 = scmp.ne.s32.totalorder %s17_s10, %s131_s13  ;;  %p137_p2 = scmp.lt.s32.totalorder %s131_s13, %s131_s13 }
   0x7   :  { %p138_p3 = por %p137_p2, %p136_p1 }
   0x9   :  { %p139_p4 = pnand %p138_p3, %p132_p0 }
   0xb   :  { %142 = shalt.err (!%p139_p4)
}
   0xc   :  { %19 = dma.hbm_to_vmem [thread:$0]  %s221_s0, 32, %s17_s10, [#allocation3]  }
   0xd   :  { %s151_s16 = scalar_lea.vmem %s27_s12, 32  ;;  %p156_p6 = scmp.lt.s32.totalorder %s27_s12, %s27_s12 }
   0xe   :  { %p152_p5 = scmp.ne.s32.totalorder %s27_s12, %s151_s16  ;;  %p157_p7 = scmp.lt.s32.totalorder %s151_s16, %s151_s16 }
  0x10   :  { %p158_p8 = por %p157_p7, %p156_p6 }
  0x12   :  { %p159_p9 = pnand %p158_p8, %p152_p5 }
  0x14   :  { %162 = shalt.err (!%p159_p9)
}
  0x15   :  { %29 = dma.hbm_to_vmem [thread:$0]  %s222_s1, 32, %s27_s12, [#allocation6]  }
  0x16   :  { %183 = dma.done.wait [#allocation3], 32  }
  0x17   :  { %184 = vsyncadd [#allocation3], 4294967264 }
  0x18   :  { %185 = dma.done.wait [#allocation6], 32  }
  0x19   :  { %186 = vsyncadd [#allocation6], 4294967264  ;;  %v36_v0 = vld [vmem:[#allocation2] sm:$0x3]  ;;  %vm40_vm0 = vcmask 123904   ;;  %v72_v21 = vlaneseq  ;;  %vm79_vm2 = vcmask 1024  }
  0x1a   :  { %v38_v1 = vld [vmem:[#allocation5] sm:$0x3]  ;;  %v37_v2 = vmul.f32 0.25, %v36_v0  ;;  %s191_s0 = smov [#allocation7]  }
  0x1b   :  { %v39_v3 = vmul.f32 0.25, %v38_v1  ;;  %v73_v24 = vshrl.u32 %v72_v21, 7  ;;  %s98_s1 = sshll.u32 %s191_s0, 4  ;;  %s99_s1 = int_to_ptr.vmem [resolvable:$true] %s98_s1 }
  0x1c   :  { %v41_v4 = vsel %vm40_vm0, %v37_v2, -inf  ;;  %s163_s20 = scalar_lea.vmem %s99_s1, 128  ;;  %p168_p11 = scmp.lt.s32.totalorder %s99_s1, %s99_s1 }
  0x1d   :  { %42 = vmax.xlane.f32.xlu0 %v41_v4  ;;  %v52_v5 = vsel %vm40_vm0, %v39_v3, -inf  ;;  %vm77_vm1 = vcmp.lt.s32.totalorder %v73_v24, 2  ;;  %p164_p10 = scmp.ne.s32.totalorder %s99_s1, %s163_s20  ;;  %p169_p12 = scmp.lt.s32.totalorder %s163_s20, %s163_s20 }
  0x1f   :  { %p170_p13 = por %p169_p12, %p168_p11 }
  0x21   :  { %53 = vmax.xlane.f32.xlu0 %v52_v5  ;;  %p171_p0 = pnand %p170_p13, %p164_p10 }
  0xa6   :  { %v43_v6 = vpop.xlane.xlu0 %42 }
  0xa7   :  { %v44_v7 = vsub.f32 %v37_v2, %v43_v6 }
  0xa9   :  { %v45_v8 = vmul.f32 1.442695, %v44_v7 }
  0xaa   :  { %v54_v9 = vpop.xlane.xlu0 %53 }
  0xab   :  { %113 = vpow2.f32 %v45_v8  ;;  %v55_v10 = vsub.f32 %v39_v3, %v54_v9 }
  0xad   :  { %v56_v11 = vmul.f32 1.442695, %v55_v10  ;;  %v63_v14 = vsub.f32 %v55_v10, %v44_v7 }
  0xaf   :  { %115 = vpow2.f32 %v56_v11 }
  0xb8   :  { %v114_v12 = vpop.eup %113 }
  0xb9   :  { %v47_v13 = vsel %vm40_vm0, %v114_v12, 0.0 }
  0xba   :  { %48 = vadd.xlane.f32.xlu1 %v47_v13 }
  0xbc   :  { %v116_v15 = vpop.eup %115 }
  0xbd   :  { %v58_v16 = vsel %vm40_vm0, %v116_v15, 0.0  ;;  %v64_v17 = vmul.f32 %v116_v15, %v63_v14 }
  0xbe   :  { %59 = vadd.xlane.f32.xlu1 %v58_v16 }
  0xbf   :  { %v65_v18 = vsel %vm40_vm0, %v64_v17, 0.0 }
  0xc0   :  { %66 = vadd.xlane.f32.xlu0 %v65_v18 }
 0x143   :  { %v49_v19 = vpop.xlane.xlu1 %48 }
 0x144   :  { %117 = vlog2.f32 %v49_v19 }
 0x147   :  { %v60_v20 = vpop.xlane.xlu1 %59 }
 0x148   :  { %119 = vlog2.f32 %v60_v20 }
 0x149   :  { %121 = vrcp.f32 %v60_v20  ;;  %v67_v28 = vpop.xlane.xlu0 %66 }
 0x151   :  { %v118_v22 = vpop.eup %117 }
 0x152   :  { %v51_v26 = vmul.f32 0.6931472, %v118_v22 }
 0x155   :  { %v120_v23 = vpop.eup %119 }
 0x156   :  { %v122_v25 = vpop.eup %121  ;;  %v62_v27 = vmul.f32 0.6931472, %v120_v23 }
 0x157   :  { %v69_v29 = vmul.f32 %v122_v25, %v67_v28 }
 0x158   :  { %v70_v30 = vsub.f32 %v51_v26, %v62_v27 }
 0x15a   :  { %v71_v31 = vadd.f32 %v70_v30, %v69_v29 }
 0x15c   :  { %v78_v32 = vsel %vm77_vm1, %v71_v31, 0.0 }
 0x15d   :  { %v80_v33 = vsel %vm79_vm2, %v78_v32, 0.0 }
 0x15e   :  { %81 = vadd.xlane.f32.xlu1 %v80_v33 }
 0x1e7   :  { %v82_v34 = vpop.xlane.xlu1 %81 }
 0x1e8   :  { %v83_v35 = vrot.slane %v82_v34, 4 }
 0x1ea   :  { %v84_v36 = vadd.f32 %v83_v35, %v82_v34 }
 0x1ec   :  { %v85_v37 = vrot.slane %v84_v36, 2 }
 0x1ee   :  { %v86_v38 = vadd.f32 %v85_v37, %v84_v36 }
 0x1f0   :  { %v87_v39 = vrot.slane %v86_v38, 1 }
 0x1f2   :  { %v88_v40 = vadd.f32 %v87_v39, %v86_v38 }
 0x1f4   :  { %108 = vpush %v88_v40 }
 0x225   :  { %s109_s19 = spop %108 }
 0x226   :  { %v90_v41 = vstv %s109_s19 }
 0x227   :  { %91 = vst [vmem:[#allocation7] sm:$0xff] %v90_v41 }
 0x228   :  { %174 = shalt.err (!%p171_p0)
}
 0x229   :  { %101 = dma.vmem_to_hbm [thread:$0]  %s99_s1, 128, %s223_s2, [#allocation4]  }
 0x22a   :  { %187 = dma.done.wait [#allocation4], 128  }
 0x22b   :  { %188 = vsyncadd [#allocation4], 4294967168 }
 0x22c   :  { %105 = vsyncpa [#allocation3], 1 }
 0x22d   :  { %106 = vsyncpa [#allocation6], 1 }
 0x22e   :  { %107 = vsyncpa [#allocation4], 1 }

</bundles_post_ra>
